<compile_context>
chip_gen: v5e
topology: v5e:2x2
jax: 0.10.0
libtpu: 0.0.40
codegen_flags: <defaults>
</compile_context>

<pallas_src>
import functools

import jax
import jax.numpy as jnp
from jax.experimental import pallas as pl
from jax.experimental.pallas import tpu as pltpu


def lstm_decoder_kernel(x_ref, wih_ref, whh_ref, b_ref, wlog_ref, blog_ref,
                        out_ref, hs_scr, *, T, B, H):
    """Single-invocation LSTM decoder.

    x_ref   : (T*B, E)   time-major embedded tokens (row = t*B + b)
    wih_ref : (E, 4H)    fused input weights, gate order [i | f | g | o]
    whh_ref : (H, 4H)    fused recurrent weights
    b_ref   : (1, 4H)    fused bias (b_ih + b_hh)
    wlog_ref: (H, Vp)    vocab projection weight (zero-padded to Vp = mult of 128)
    blog_ref: (1, Vp)    vocab projection bias (zero-padded)
    out_ref : (T*B, Vp)  logits slab (lane-dense)
    hs_scr  : (T*B, H)   VMEM scratch collecting h_t for the batched projection
    """
    # ---- Phase 1: input projection for ALL timesteps (one big MXU matmul), ----
    # hoisted out of the serial recurrence.  (T*B, E) @ (E, 4H) + bias.
    xg = (jnp.dot(x_ref[...], wih_ref[...], preferred_element_type=jnp.float32)
          + b_ref[...])                                         # (T*B, 4H)

    w_hh = whh_ref[...]                                         # (H, 4H)

    # tanh-only nonlinearity trick: sigmoid(x) = 0.5*(tanh(0.5*x)+1) for the
    # i/f/o gate columns, plain tanh for the g columns -> a single EUP pass
    # over the fused (B, 4H) gate tensor per step.
    col = jax.lax.broadcasted_iota(jnp.int32, (1, 4 * H), 1)
    is_g = jnp.logical_and(col >= 2 * H, col < 3 * H)
    pre_scale = jnp.where(is_g, 1.0, 0.5).astype(jnp.float32)   # (1, 4H)

    # ---- Phase 2: serial recurrence (only h @ W_hh stays on the critical path). ----
    h = jnp.zeros((B, H), jnp.float32)
    c = jnp.zeros((B, H), jnp.float32)
    for t in range(T):                       # static unroll; T is small & known
        g_all = (xg[t * B:(t + 1) * B, :]
                 + jnp.dot(h, w_hh, preferred_element_type=jnp.float32))  # (B, 4H)
        t_all = jnp.tanh(g_all * pre_scale)                               # one EUP pass
        i_g = 0.5 * (t_all[:, 0:H] + 1.0)
        f_g = 0.5 * (t_all[:, H:2 * H] + 1.0)
        g_g = t_all[:, 2 * H:3 * H]
        o_g = 0.5 * (t_all[:, 3 * H:4 * H] + 1.0)
        c = f_g * c + i_g * g_g
        h = o_g * jnp.tanh(c)
        hs_scr[pl.ds(t * B, B), :] = h

    # ---- Phase 3: single fused vocab projection, lane-dense output slab. ----
    out_ref[...] = (jnp.dot(hs_scr[...], wlog_ref[...],
                            preferred_element_type=jnp.float32)
                    + blog_ref[...])


@jax.jit
def lstm_decoder_forward(token_ids, params):
    """token_ids: (B, T) int32.  Returns logits (B, T, V)."""
    embed_tbl = params["embed"]          # (V, E)
    w_ih = params["w_ih"]                # (E, 4H)   fused, gate order i,f,g,o
    w_hh = params["w_hh"]                # (H, 4H)
    b = params["b"]                      # (1, 4H)   b_ih + b_hh
    w_log = params["w_log"]              # (H, V)    nn.Linear weight^T
    b_log = params["b_log"]              # (1, V)

    B, T = token_ids.shape
    V, E = embed_tbl.shape
    H = w_hh.shape[0]
    Vp = ((V + 127) // 128) * 128        # lane-dense (multiple-of-128) logits width

    # Embedding gather (plain-JAX glue), time-major flatten: row = t*B + b.
    x_emb = jnp.take(embed_tbl, token_ids, axis=0)              # (B, T, E)
    x_tm = jnp.transpose(x_emb, (1, 0, 2)).reshape(T * B, E)    # (T*B, E)

    # Zero-pad the vocab projection to a lane-dense width (unmasked stores).
    w_log_p = jnp.pad(w_log, ((0, 0), (0, Vp - V)))             # (H, Vp)
    b_log_p = jnp.pad(b_log, ((0, 0), (0, Vp - V)))             # (1, Vp)

    kernel = functools.partial(lstm_decoder_kernel, T=T, B=B, H=H)

    # Single kernel invocation (no grid): everything fits comfortably in VMEM at
    # these shapes, so per-grid-step overhead and weight double-buffering go away.
    # NOTE: at production sizes (H~1k, V~32k+) the projection would instead be a
    # separate pallas_call tiled over V with a "parallel" grid axis (megacore/VMEM).
    out2d = pl.pallas_call(
        kernel,
        out_shape=jax.ShapeDtypeStruct((T * B, Vp), jnp.float32),
        in_specs=[pl.BlockSpec(memory_space=pltpu.MemorySpace.VMEM)] * 6,
        out_specs=pl.BlockSpec(memory_space=pltpu.MemorySpace.VMEM),
        scratch_shapes=[pltpu.VMEM((T * B, H), jnp.float32)],   # hidden-state slab
    )(x_tm, w_ih, w_hh, b, w_log_p, b_log_p)

    logits = out2d[:, :V].reshape(T, B, V).transpose(1, 0, 2)   # (B, T, V)
    # torch forward does x.squeeze() before the linear; with B>1 and T>1 it is a
    # no-op on the leading dims, so returning (B, T, V) matches.
    return logits


def lstm_decoder_reference(token_ids, params):
    """Pure-JAX reference matching nn.Embedding -> nn.LSTM -> nn.Linear."""
    embed_tbl = params["embed"]
    w_ih, w_hh, b = params["w_ih"], params["w_hh"], params["b"]
    w_log, b_log = params["w_log"], params["b_log"]
    H = w_hh.shape[0]

    x_emb = jnp.take(embed_tbl, token_ids, axis=0)   # (B, T, E)
    B, T, E = x_emb.shape

    def step(carry, x_t):
        h, c = carry
        g = x_t @ w_ih + h @ w_hh + b                # (B, 4H), order i,f,g,o
        i = jax.nn.sigmoid(g[:, 0:H])
        f = jax.nn.sigmoid(g[:, H:2 * H])
        gg = jnp.tanh(g[:, 2 * H:3 * H])
        o = jax.nn.sigmoid(g[:, 3 * H:4 * H])
        c_new = f * c + i * gg
        h_new = o * jnp.tanh(c_new)
        return (h_new, c_new), h_new

    h0 = jnp.zeros((B, H), jnp.float32)
    c0 = jnp.zeros((B, H), jnp.float32)
    _, hs = jax.lax.scan(step, (h0, c0), jnp.transpose(x_emb, (1, 0, 2)))
    hs = jnp.transpose(hs, (1, 0, 2))                # (B, T, H)
    return hs @ w_log + b_log                        # (B, T, V)


def init_params(key, embed_size, hidden_size, vocab_size):
    """Deterministic synthetic params (shapes follow nn.Module.__init__), fused layout."""
    E, H, V = embed_size, hidden_size, vocab_size
    k = jax.random.split(key, 7)
    s = 1.0 / jnp.sqrt(jnp.float32(H))
    # PyTorch stores weight_ih_l0 as (4H, E); we keep the transposed, gate-fused
    # layout (E, 4H) / (H, 4H) so each step is a single row-major x @ W matmul.
    w_ih = jax.random.uniform(k[0], (E, 4 * H), jnp.float32, -s, s)
    w_hh = jax.random.uniform(k[1], (H, 4 * H), jnp.float32, -s, s)
    b_ih = jax.random.uniform(k[2], (1, 4 * H), jnp.float32, -s, s)
    b_hh = jax.random.uniform(k[3], (1, 4 * H), jnp.float32, -s, s)
    return {
        "embed": jax.random.normal(k[4], (V, E), jnp.float32),            # nn.Embedding
        "w_ih": w_ih,                                                     # (E, 4H)
        "w_hh": w_hh,                                                     # (H, 4H)
        "b": b_ih + b_hh,                                                 # fused biases
        "w_log": jax.random.uniform(k[5], (H, V), jnp.float32, -s, s),    # nn.Linear W^T
        "b_log": jax.random.uniform(k[6], (1, V), jnp.float32, -s, s),    # nn.Linear bias
    }


if __name__ == "__main__":
    EMBED, HIDDEN, VOCAB = 32, 32, 64
    BATCH, SEQ = 8, 8

    key = jax.random.PRNGKey(0)
    pkey, dkey = jax.random.split(key)
    params = init_params(pkey, EMBED, HIDDEN, VOCAB)
    token_ids = jax.random.randint(dkey, (BATCH, SEQ), 0, VOCAB, dtype=jnp.int32)

    logits = lstm_decoder_forward(token_ids, params)
    logits = jax.block_until_ready(logits)

    ref = lstm_decoder_reference(token_ids, params)
    assert logits.shape == (BATCH, SEQ, VOCAB), logits.shape
    assert jnp.allclose(logits, ref, atol=1e-4, rtol=1e-4), (
        float(jnp.max(jnp.abs(logits - ref))))

    print("KERNEL_OK")
</pallas_src>

<mosaic_0001>
module attributes {stable_mosaic.version = 11 : i64} {
  func.func @lstm_decoder_kernel(%arg0: memref<64x32xf32, #tpu.memory_space<vmem>>, %arg1: memref<32x128xf32, #tpu.memory_space<vmem>>, %arg2: memref<32x128xf32, #tpu.memory_space<vmem>>, %arg3: memref<1x128xf32, #tpu.memory_space<vmem>>, %arg4: memref<32x128xf32, #tpu.memory_space<vmem>>, %arg5: memref<1x128xf32, #tpu.memory_space<vmem>>, %arg6: memref<64x128xf32, #tpu.memory_space<vmem>>, %arg7: memref<64x32xf32, #tpu.memory_space<vmem>>) attributes {dimension_semantics = [], scalar_prefetch = 0 : i64, scratch_operands = 1 : i64, tpu.core_type = #tpu.core_type<tc>} {
    %c0 = arith.constant 0 : index
    %c0_0 = arith.constant 0 : index
    %0 = vector.load %arg0[%c0, %c0_0] : memref<64x32xf32, #tpu.memory_space<vmem>>, vector<64x32xf32>
    %c0_1 = arith.constant 0 : index
    %c0_2 = arith.constant 0 : index
    %1 = vector.load %arg1[%c0_1, %c0_2] : memref<32x128xf32, #tpu.memory_space<vmem>>, vector<32x128xf32>
    %cst = arith.constant dense<0.000000e+00> : vector<64x128xf32>
    %2 = tpu.matmul %0, %1, %cst {dimension_numbers = #tpu.dot_dimension_numbers<[1], [0], [0], [1], [0, 0, 1, 1], [], []>} : vector<64x32xf32>, vector<32x128xf32>, vector<64x128xf32> -> vector<64x128xf32>
    %c0_3 = arith.constant 0 : index
    %c0_4 = arith.constant 0 : index
    %3 = vector.load %arg3[%c0_3, %c0_4] : memref<1x128xf32, #tpu.memory_space<vmem>>, vector<1x128xf32>
    %4 = vector.broadcast %3 : vector<1x128xf32> to vector<64x128xf32>
    %5 = arith.addf %2, %4 : vector<64x128xf32>
    %c0_5 = arith.constant 0 : index
    %c0_6 = arith.constant 0 : index
    %6 = vector.load %arg2[%c0_5, %c0_6] : memref<32x128xf32, #tpu.memory_space<vmem>>, vector<32x128xf32>
    %7 = tpu.iota {dimensions = array<i32: 1>} : vector<1x128xi32>
    %c64_i32 = arith.constant 64 : i32
    %8 = vector.broadcast %c64_i32 : i32 to vector<1x128xi32>
    %9 = arith.cmpi sge, %7, %8 : vector<1x128xi32>
    %c96_i32 = arith.constant 96 : i32
    %10 = vector.broadcast %c96_i32 : i32 to vector<1x128xi32>
    %11 = arith.cmpi slt, %7, %10 : vector<1x128xi32>
    %12 = arith.andi %9, %11 : vector<1x128xi1>
    %cst_7 = arith.constant 1.000000e+00 : f32
    %cst_8 = arith.constant 5.000000e-01 : f32
    %13 = vector.broadcast %cst_7 : f32 to vector<1x128xf32>
    %14 = vector.broadcast %cst_8 : f32 to vector<1x128xf32>
    %15 = arith.select %12, %13, %14 : vector<1x128xi1>, vector<1x128xf32>
    %cst_9 = arith.constant 0.000000e+00 : f32
    %16 = vector.broadcast %cst_9 : f32 to vector<8x32xf32>
    %cst_10 = arith.constant 0.000000e+00 : f32
    %17 = vector.broadcast %cst_10 : f32 to vector<8x32xf32>
    %18 = vector.extract_strided_slice %5 {offsets = [0, 0], sizes = [8, 128], strides = [1, 1]} : vector<64x128xf32> to vector<8x128xf32>
    %cst_11 = arith.constant dense<0.000000e+00> : vector<8x128xf32>
    %19 = tpu.matmul %16, %6, %cst_11 {dimension_numbers = #tpu.dot_dimension_numbers<[1], [0], [0], [1], [0, 0, 1, 1], [], []>} : vector<8x32xf32>, vector<32x128xf32>, vector<8x128xf32> -> vector<8x128xf32>
    %20 = arith.addf %18, %19 : vector<8x128xf32>
    %21 = vector.broadcast %15 : vector<1x128xf32> to vector<8x128xf32>
    %22 = arith.mulf %20, %21 : vector<8x128xf32>
    %23 = math.tanh %22 : vector<8x128xf32>
    %24 = vector.extract_strided_slice %23 {offsets = [0, 0], sizes = [8, 32], strides = [1, 1]} : vector<8x128xf32> to vector<8x32xf32>
    %cst_12 = arith.constant 1.000000e+00 : f32
    %25 = vector.broadcast %cst_12 : f32 to vector<8x32xf32>
    %26 = arith.addf %24, %25 : vector<8x32xf32>
    %cst_13 = arith.constant 5.000000e-01 : f32
    %27 = vector.broadcast %cst_13 : f32 to vector<8x32xf32>
    %28 = arith.mulf %27, %26 : vector<8x32xf32>
    %29 = vector.extract_strided_slice %23 {offsets = [0, 32], sizes = [8, 32], strides = [1, 1]} : vector<8x128xf32> to vector<8x32xf32>
    %cst_14 = arith.constant 1.000000e+00 : f32
    %30 = vector.broadcast %cst_14 : f32 to vector<8x32xf32>
    %31 = arith.addf %29, %30 : vector<8x32xf32>
    %cst_15 = arith.constant 5.000000e-01 : f32
    %32 = vector.broadcast %cst_15 : f32 to vector<8x32xf32>
    %33 = arith.mulf %32, %31 : vector<8x32xf32>
    %34 = vector.extract_strided_slice %23 {offsets = [0, 64], sizes = [8, 32], strides = [1, 1]} : vector<8x128xf32> to vector<8x32xf32>
    %35 = vector.extract_strided_slice %23 {offsets = [0, 96], sizes = [8, 32], strides = [1, 1]} : vector<8x128xf32> to vector<8x32xf32>
    %cst_16 = arith.constant 1.000000e+00 : f32
    %36 = vector.broadcast %cst_16 : f32 to vector<8x32xf32>
    %37 = arith.addf %35, %36 : vector<8x32xf32>
    %cst_17 = arith.constant 5.000000e-01 : f32
    %38 = vector.broadcast %cst_17 : f32 to vector<8x32xf32>
    %39 = arith.mulf %38, %37 : vector<8x32xf32>
    %40 = arith.mulf %33, %17 : vector<8x32xf32>
    %41 = arith.mulf %28, %34 : vector<8x32xf32>
    %42 = arith.addf %40, %41 : vector<8x32xf32>
    %43 = math.tanh %42 : vector<8x32xf32>
    %44 = arith.mulf %39, %43 : vector<8x32xf32>
    %c0_18 = arith.constant 0 : index
    %c0_19 = arith.constant 0 : index
    %45 = vector.load %arg7[%c0_18, %c0_19] : memref<64x32xf32, #tpu.memory_space<vmem>>, vector<8x32xf32>
    tpu.vector_store %arg7[%c0_18, %c0_19], %44 {strides = array<i32>} : memref<64x32xf32, #tpu.memory_space<vmem>>, vector<8x32xf32>,
    %46 = vector.extract_strided_slice %5 {offsets = [8, 0], sizes = [8, 128], strides = [1, 1]} : vector<64x128xf32> to vector<8x128xf32>
    %cst_20 = arith.constant dense<0.000000e+00> : vector<8x128xf32>
    %47 = tpu.matmul %44, %6, %cst_20 {dimension_numbers = #tpu.dot_dimension_numbers<[1], [0], [0], [1], [0, 0, 1, 1], [], []>} : vector<8x32xf32>, vector<32x128xf32>, vector<8x128xf32> -> vector<8x128xf32>
    %48 = arith.addf %46, %47 : vector<8x128xf32>
    %49 = vector.broadcast %15 : vector<1x128xf32> to vector<8x128xf32>
    %50 = arith.mulf %48, %49 : vector<8x128xf32>
    %51 = math.tanh %50 : vector<8x128xf32>
    %52 = vector.extract_strided_slice %51 {offsets = [0, 0], sizes = [8, 32], strides = [1, 1]} : vector<8x128xf32> to vector<8x32xf32>
    %cst_21 = arith.constant 1.000000e+00 : f32
    %53 = vector.broadcast %cst_21 : f32 to vector<8x32xf32>
    %54 = arith.addf %52, %53 : vector<8x32xf32>
    %cst_22 = arith.constant 5.000000e-01 : f32
    %55 = vector.broadcast %cst_22 : f32 to vector<8x32xf32>
    %56 = arith.mulf %55, %54 : vector<8x32xf32>
    %57 = vector.extract_strided_slice %51 {offsets = [0, 32], sizes = [8, 32], strides = [1, 1]} : vector<8x128xf32> to vector<8x32xf32>
    %cst_23 = arith.constant 1.000000e+00 : f32
    %58 = vector.broadcast %cst_23 : f32 to vector<8x32xf32>
    %59 = arith.addf %57, %58 : vector<8x32xf32>
    %cst_24 = arith.constant 5.000000e-01 : f32
    %60 = vector.broadcast %cst_24 : f32 to vector<8x32xf32>
    %61 = arith.mulf %60, %59 : vector<8x32xf32>
    %62 = vector.extract_strided_slice %51 {offsets = [0, 64], sizes = [8, 32], strides = [1, 1]} : vector<8x128xf32> to vector<8x32xf32>
    %63 = vector.extract_strided_slice %51 {offsets = [0, 96], sizes = [8, 32], strides = [1, 1]} : vector<8x128xf32> to vector<8x32xf32>
    %cst_25 = arith.constant 1.000000e+00 : f32
    %64 = vector.broadcast %cst_25 : f32 to vector<8x32xf32>
    %65 = arith.addf %63, %64 : vector<8x32xf32>
    %cst_26 = arith.constant 5.000000e-01 : f32
    %66 = vector.broadcast %cst_26 : f32 to vector<8x32xf32>
    %67 = arith.mulf %66, %65 : vector<8x32xf32>
    %68 = arith.mulf %61, %42 : vector<8x32xf32>
    %69 = arith.mulf %56, %62 : vector<8x32xf32>
    %70 = arith.addf %68, %69 : vector<8x32xf32>
    %71 = math.tanh %70 : vector<8x32xf32>
    %72 = arith.mulf %67, %71 : vector<8x32xf32>
    %c8 = arith.constant 8 : index
    %c0_27 = arith.constant 0 : index
    %73 = vector.load %arg7[%c8, %c0_27] : memref<64x32xf32, #tpu.memory_space<vmem>>, vector<8x32xf32>
    tpu.vector_store %arg7[%c8, %c0_27], %72 {strides = array<i32>} : memref<64x32xf32, #tpu.memory_space<vmem>>, vector<8x32xf32>,
    %74 = vector.extract_strided_slice %5 {offsets = [16, 0], sizes = [8, 128], strides = [1, 1]} : vector<64x128xf32> to vector<8x128xf32>
    %cst_28 = arith.constant dense<0.000000e+00> : vector<8x128xf32>
    %75 = tpu.matmul %72, %6, %cst_28 {dimension_numbers = #tpu.dot_dimension_numbers<[1], [0], [0], [1], [0, 0, 1, 1], [], []>} : vector<8x32xf32>, vector<32x128xf32>, vector<8x128xf32> -> vector<8x128xf32>
    %76 = arith.addf %74, %75 : vector<8x128xf32>
    %77 = vector.broadcast %15 : vector<1x128xf32> to vector<8x128xf32>
    %78 = arith.mulf %76, %77 : vector<8x128xf32>
    %79 = math.tanh %78 : vector<8x128xf32>
    %80 = vector.extract_strided_slice %79 {offsets = [0, 0], sizes = [8, 32], strides = [1, 1]} : vector<8x128xf32> to vector<8x32xf32>
    %cst_29 = arith.constant 1.000000e+00 : f32
    %81 = vector.broadcast %cst_29 : f32 to vector<8x32xf32>
    %82 = arith.addf %80, %81 : vector<8x32xf32>
    %cst_30 = arith.constant 5.000000e-01 : f32
    %83 = vector.broadcast %cst_30 : f32 to vector<8x32xf32>
    %84 = arith.mulf %83, %82 : vector<8x32xf32>
    %85 = vector.extract_strided_slice %79 {offsets = [0, 32], sizes = [8, 32], strides = [1, 1]} : vector<8x128xf32> to vector<8x32xf32>
    %cst_31 = arith.constant 1.000000e+00 : f32
    %86 = vector.broadcast %cst_31 : f32 to vector<8x32xf32>
    %87 = arith.addf %85, %86 : vector<8x32xf32>
    %cst_32 = arith.constant 5.000000e-01 : f32
    %88 = vector.broadcast %cst_32 : f32 to vector<8x32xf32>
    %89 = arith.mulf %88, %87 : vector<8x32xf32>
    %90 = vector.extract_strided_slice %79 {offsets = [0, 64], sizes = [8, 32], strides = [1, 1]} : vector<8x128xf32> to vector<8x32xf32>
    %91 = vector.extract_strided_slice %79 {offsets = [0, 96], sizes = [8, 32], strides = [1, 1]} : vector<8x128xf32> to vector<8x32xf32>
    %cst_33 = arith.constant 1.000000e+00 : f32
    %92 = vector.broadcast %cst_33 : f32 to vector<8x32xf32>
    %93 = arith.addf %91, %92 : vector<8x32xf32>
    %cst_34 = arith.constant 5.000000e-01 : f32
    %94 = vector.broadcast %cst_34 : f32 to vector<8x32xf32>
    %95 = arith.mulf %94, %93 : vector<8x32xf32>
    %96 = arith.mulf %89, %70 : vector<8x32xf32>
    %97 = arith.mulf %84, %90 : vector<8x32xf32>
    %98 = arith.addf %96, %97 : vector<8x32xf32>
    %99 = math.tanh %98 : vector<8x32xf32>
    %100 = arith.mulf %95, %99 : vector<8x32xf32>
    %c16 = arith.constant 16 : index
    %c0_35 = arith.constant 0 : index
    %101 = vector.load %arg7[%c16, %c0_35] : memref<64x32xf32, #tpu.memory_space<vmem>>, vector<8x32xf32>
    tpu.vector_store %arg7[%c16, %c0_35], %100 {strides = array<i32>} : memref<64x32xf32, #tpu.memory_space<vmem>>, vector<8x32xf32>,
    %102 = vector.extract_strided_slice %5 {offsets = [24, 0], sizes = [8, 128], strides = [1, 1]} : vector<64x128xf32> to vector<8x128xf32>
    %cst_36 = arith.constant dense<0.000000e+00> : vector<8x128xf32>
    %103 = tpu.matmul %100, %6, %cst_36 {dimension_numbers = #tpu.dot_dimension_numbers<[1], [0], [0], [1], [0, 0, 1, 1], [], []>} : vector<8x32xf32>, vector<32x128xf32>, vector<8x128xf32> -> vector<8x128xf32>
    %104 = arith.addf %102, %103 : vector<8x128xf32>
    %105 = vector.broadcast %15 : vector<1x128xf32> to vector<8x128xf32>
    %106 = arith.mulf %104, %105 : vector<8x128xf32>
    %107 = math.tanh %106 : vector<8x128xf32>
    %108 = vector.extract_strided_slice %107 {offsets = [0, 0], sizes = [8, 32], strides = [1, 1]} : vector<8x128xf32> to vector<8x32xf32>
    %cst_37 = arith.constant 1.000000e+00 : f32
    %109 = vector.broadcast %cst_37 : f32 to vector<8x32xf32>
    %110 = arith.addf %108, %109 : vector<8x32xf32>
    %cst_38 = arith.constant 5.000000e-01 : f32
    %111 = vector.broadcast %cst_38 : f32 to vector<8x32xf32>
    %112 = arith.mulf %111, %110 : vector<8x32xf32>
    %113 = vector.extract_strided_slice %107 {offsets = [0, 32], sizes = [8, 32], strides = [1, 1]} : vector<8x128xf32> to vector<8x32xf32>
    %cst_39 = arith.constant 1.000000e+00 : f32
    %114 = vector.broadcast %cst_39 : f32 to vector<8x32xf32>
    %115 = arith.addf %113, %114 : vector<8x32xf32>
    %cst_40 = arith.constant 5.000000e-01 : f32
    %116 = vector.broadcast %cst_40 : f32 to vector<8x32xf32>
    %117 = arith.mulf %116, %115 : vector<8x32xf32>
    %118 = vector.extract_strided_slice %107 {offsets = [0, 64], sizes = [8, 32], strides = [1, 1]} : vector<8x128xf32> to vector<8x32xf32>
    %119 = vector.extract_strided_slice %107 {offsets = [0, 96], sizes = [8, 32], strides = [1, 1]} : vector<8x128xf32> to vector<8x32xf32>
    %cst_41 = arith.constant 1.000000e+00 : f32
    %120 = vector.broadcast %cst_41 : f32 to vector<8x32xf32>
    %121 = arith.addf %119, %120 : vector<8x32xf32>
    %cst_42 = arith.constant 5.000000e-01 : f32
    %122 = vector.broadcast %cst_42 : f32 to vector<8x32xf32>
    %123 = arith.mulf %122, %121 : vector<8x32xf32>
    %124 = arith.mulf %117, %98 : vector<8x32xf32>
    %125 = arith.mulf %112, %118 : vector<8x32xf32>
    %126 = arith.addf %124, %125 : vector<8x32xf32>
    %127 = math.tanh %126 : vector<8x32xf32>
    %128 = arith.mulf %123, %127 : vector<8x32xf32>
    %c24 = arith.constant 24 : index
    %c0_43 = arith.constant 0 : index
    %129 = vector.load %arg7[%c24, %c0_43] : memref<64x32xf32, #tpu.memory_space<vmem>>, vector<8x32xf32>
    tpu.vector_store %arg7[%c24, %c0_43], %128 {strides = array<i32>} : memref<64x32xf32, #tpu.memory_space<vmem>>, vector<8x32xf32>,
    %130 = vector.extract_strided_slice %5 {offsets = [32, 0], sizes = [8, 128], strides = [1, 1]} : vector<64x128xf32> to vector<8x128xf32>
    %cst_44 = arith.constant dense<0.000000e+00> : vector<8x128xf32>
    %131 = tpu.matmul %128, %6, %cst_44 {dimension_numbers = #tpu.dot_dimension_numbers<[1], [0], [0], [1], [0, 0, 1, 1], [], []>} : vector<8x32xf32>, vector<32x128xf32>, vector<8x128xf32> -> vector<8x128xf32>
    %132 = arith.addf %130, %131 : vector<8x128xf32>
    %133 = vector.broadcast %15 : vector<1x128xf32> to vector<8x128xf32>
    %134 = arith.mulf %132, %133 : vector<8x128xf32>
    %135 = math.tanh %134 : vector<8x128xf32>
    %136 = vector.extract_strided_slice %135 {offsets = [0, 0], sizes = [8, 32], strides = [1, 1]} : vector<8x128xf32> to vector<8x32xf32>
    %cst_45 = arith.constant 1.000000e+00 : f32
    %137 = vector.broadcast %cst_45 : f32 to vector<8x32xf32>
    %138 = arith.addf %136, %137 : vector<8x32xf32>
    %cst_46 = arith.constant 5.000000e-01 : f32
    %139 = vector.broadcast %cst_46 : f32 to vector<8x32xf32>
    %140 = arith.mulf %139, %138 : vector<8x32xf32>
    %141 = vector.extract_strided_slice %135 {offsets = [0, 32], sizes = [8, 32], strides = [1, 1]} : vector<8x128xf32> to vector<8x32xf32>
    %cst_47 = arith.constant 1.000000e+00 : f32
    %142 = vector.broadcast %cst_47 : f32 to vector<8x32xf32>
    %143 = arith.addf %141, %142 : vector<8x32xf32>
    %cst_48 = arith.constant 5.000000e-01 : f32
    %144 = vector.broadcast %cst_48 : f32 to vector<8x32xf32>
    %145 = arith.mulf %144, %143 : vector<8x32xf32>
    %146 = vector.extract_strided_slice %135 {offsets = [0, 64], sizes = [8, 32], strides = [1, 1]} : vector<8x128xf32> to vector<8x32xf32>
    %147 = vector.extract_strided_slice %135 {offsets = [0, 96], sizes = [8, 32], strides = [1, 1]} : vector<8x128xf32> to vector<8x32xf32>
    %cst_49 = arith.constant 1.000000e+00 : f32
    %148 = vector.broadcast %cst_49 : f32 to vector<8x32xf32>
    %149 = arith.addf %147, %148 : vector<8x32xf32>
    %cst_50 = arith.constant 5.000000e-01 : f32
    %150 = vector.broadcast %cst_50 : f32 to vector<8x32xf32>
    %151 = arith.mulf %150, %149 : vector<8x32xf32>
    %152 = arith.mulf %145, %126 : vector<8x32xf32>
    %153 = arith.mulf %140, %146 : vector<8x32xf32>
    %154 = arith.addf %152, %153 : vector<8x32xf32>
    %155 = math.tanh %154 : vector<8x32xf32>
    %156 = arith.mulf %151, %155 : vector<8x32xf32>
    %c32 = arith.constant 32 : index
    %c0_51 = arith.constant 0 : index
    %157 = vector.load %arg7[%c32, %c0_51] : memref<64x32xf32, #tpu.memory_space<vmem>>, vector<8x32xf32>
    tpu.vector_store %arg7[%c32, %c0_51], %156 {strides = array<i32>} : memref<64x32xf32, #tpu.memory_space<vmem>>, vector<8x32xf32>,
    %158 = vector.extract_strided_slice %5 {offsets = [40, 0], sizes = [8, 128], strides = [1, 1]} : vector<64x128xf32> to vector<8x128xf32>
    %cst_52 = arith.constant dense<0.000000e+00> : vector<8x128xf32>
    %159 = tpu.matmul %156, %6, %cst_52 {dimension_numbers = #tpu.dot_dimension_numbers<[1], [0], [0], [1], [0, 0, 1, 1], [], []>} : vector<8x32xf32>, vector<32x128xf32>, vector<8x128xf32> -> vector<8x128xf32>
    %160 = arith.addf %158, %159 : vector<8x128xf32>
    %161 = vector.broadcast %15 : vector<1x128xf32> to vector<8x128xf32>
    %162 = arith.mulf %160, %161 : vector<8x128xf32>
    %163 = math.tanh %162 : vector<8x128xf32>
    %164 = vector.extract_strided_slice %163 {offsets = [0, 0], sizes = [8, 32], strides = [1, 1]} : vector<8x128xf32> to vector<8x32xf32>
    %cst_53 = arith.constant 1.000000e+00 : f32
    %165 = vector.broadcast %cst_53 : f32 to vector<8x32xf32>
    %166 = arith.addf %164, %165 : vector<8x32xf32>
    %cst_54 = arith.constant 5.000000e-01 : f32
    %167 = vector.broadcast %cst_54 : f32 to vector<8x32xf32>
    %168 = arith.mulf %167, %166 : vector<8x32xf32>
    %169 = vector.extract_strided_slice %163 {offsets = [0, 32], sizes = [8, 32], strides = [1, 1]} : vector<8x128xf32> to vector<8x32xf32>
    %cst_55 = arith.constant 1.000000e+00 : f32
    %170 = vector.broadcast %cst_55 : f32 to vector<8x32xf32>
    %171 = arith.addf %169, %170 : vector<8x32xf32>
    %cst_56 = arith.constant 5.000000e-01 : f32
    %172 = vector.broadcast %cst_56 : f32 to vector<8x32xf32>
    %173 = arith.mulf %172, %171 : vector<8x32xf32>
    %174 = vector.extract_strided_slice %163 {offsets = [0, 64], sizes = [8, 32], strides = [1, 1]} : vector<8x128xf32> to vector<8x32xf32>
    %175 = vector.extract_strided_slice %163 {offsets = [0, 96], sizes = [8, 32], strides = [1, 1]} : vector<8x128xf32> to vector<8x32xf32>
    %cst_57 = arith.constant 1.000000e+00 : f32
    %176 = vector.broadcast %cst_57 : f32 to vector<8x32xf32>
    %177 = arith.addf %175, %176 : vector<8x32xf32>
    %cst_58 = arith.constant 5.000000e-01 : f32
    %178 = vector.broadcast %cst_58 : f32 to vector<8x32xf32>
    %179 = arith.mulf %178, %177 : vector<8x32xf32>
    %180 = arith.mulf %173, %154 : vector<8x32xf32>
    %181 = arith.mulf %168, %174 : vector<8x32xf32>
    %182 = arith.addf %180, %181 : vector<8x32xf32>
    %183 = math.tanh %182 : vector<8x32xf32>
    %184 = arith.mulf %179, %183 : vector<8x32xf32>
    %c40 = arith.constant 40 : index
    %c0_59 = arith.constant 0 : index
    %185 = vector.load %arg7[%c40, %c0_59] : memref<64x32xf32, #tpu.memory_space<vmem>>, vector<8x32xf32>
    tpu.vector_store %arg7[%c40, %c0_59], %184 {strides = array<i32>} : memref<64x32xf32, #tpu.memory_space<vmem>>, vector<8x32xf32>,
    %186 = vector.extract_strided_slice %5 {offsets = [48, 0], sizes = [8, 128], strides = [1, 1]} : vector<64x128xf32> to vector<8x128xf32>
    %cst_60 = arith.constant dense<0.000000e+00> : vector<8x128xf32>
    %187 = tpu.matmul %184, %6, %cst_60 {dimension_numbers = #tpu.dot_dimension_numbers<[1], [0], [0], [1], [0, 0, 1, 1], [], []>} : vector<8x32xf32>, vector<32x128xf32>, vector<8x128xf32> -> vector<8x128xf32>
    %188 = arith.addf %186, %187 : vector<8x128xf32>
    %189 = vector.broadcast %15 : vector<1x128xf32> to vector<8x128xf32>
    %190 = arith.mulf %188, %189 : vector<8x128xf32>
    %191 = math.tanh %190 : vector<8x128xf32>
    %192 = vector.extract_strided_slice %191 {offsets = [0, 0], sizes = [8, 32], strides = [1, 1]} : vector<8x128xf32> to vector<8x32xf32>
    %cst_61 = arith.constant 1.000000e+00 : f32
    %193 = vector.broadcast %cst_61 : f32 to vector<8x32xf32>
    %194 = arith.addf %192, %193 : vector<8x32xf32>
    %cst_62 = arith.constant 5.000000e-01 : f32
    %195 = vector.broadcast %cst_62 : f32 to vector<8x32xf32>
    %196 = arith.mulf %195, %194 : vector<8x32xf32>
    %197 = vector.extract_strided_slice %191 {offsets = [0, 32], sizes = [8, 32], strides = [1, 1]} : vector<8x128xf32> to vector<8x32xf32>
    %cst_63 = arith.constant 1.000000e+00 : f32
    %198 = vector.broadcast %cst_63 : f32 to vector<8x32xf32>
    %199 = arith.addf %197, %198 : vector<8x32xf32>
    %cst_64 = arith.constant 5.000000e-01 : f32
    %200 = vector.broadcast %cst_64 : f32 to vector<8x32xf32>
    %201 = arith.mulf %200, %199 : vector<8x32xf32>
    %202 = vector.extract_strided_slice %191 {offsets = [0, 64], sizes = [8, 32], strides = [1, 1]} : vector<8x128xf32> to vector<8x32xf32>
    %203 = vector.extract_strided_slice %191 {offsets = [0, 96], sizes = [8, 32], strides = [1, 1]} : vector<8x128xf32> to vector<8x32xf32>
    %cst_65 = arith.constant 1.000000e+00 : f32
    %204 = vector.broadcast %cst_65 : f32 to vector<8x32xf32>
    %205 = arith.addf %203, %204 : vector<8x32xf32>
    %cst_66 = arith.constant 5.000000e-01 : f32
    %206 = vector.broadcast %cst_66 : f32 to vector<8x32xf32>
    %207 = arith.mulf %206, %205 : vector<8x32xf32>
    %208 = arith.mulf %201, %182 : vector<8x32xf32>
    %209 = arith.mulf %196, %202 : vector<8x32xf32>
    %210 = arith.addf %208, %209 : vector<8x32xf32>
    %211 = math.tanh %210 : vector<8x32xf32>
    %212 = arith.mulf %207, %211 : vector<8x32xf32>
    %c48 = arith.constant 48 : index
    %c0_67 = arith.constant 0 : index
    %213 = vector.load %arg7[%c48, %c0_67] : memref<64x32xf32, #tpu.memory_space<vmem>>, vector<8x32xf32>
    tpu.vector_store %arg7[%c48, %c0_67], %212 {strides = array<i32>} : memref<64x32xf32, #tpu.memory_space<vmem>>, vector<8x32xf32>,
    %214 = vector.extract_strided_slice %5 {offsets = [56, 0], sizes = [8, 128], strides = [1, 1]} : vector<64x128xf32> to vector<8x128xf32>
    %cst_68 = arith.constant dense<0.000000e+00> : vector<8x128xf32>
    %215 = tpu.matmul %212, %6, %cst_68 {dimension_numbers = #tpu.dot_dimension_numbers<[1], [0], [0], [1], [0, 0, 1, 1], [], []>} : vector<8x32xf32>, vector<32x128xf32>, vector<8x128xf32> -> vector<8x128xf32>
    %216 = arith.addf %214, %215 : vector<8x128xf32>
    %217 = vector.broadcast %15 : vector<1x128xf32> to vector<8x128xf32>
    %218 = arith.mulf %216, %217 : vector<8x128xf32>
    %219 = math.tanh %218 : vector<8x128xf32>
    %220 = vector.extract_strided_slice %219 {offsets = [0, 0], sizes = [8, 32], strides = [1, 1]} : vector<8x128xf32> to vector<8x32xf32>
    %cst_69 = arith.constant 1.000000e+00 : f32
    %221 = vector.broadcast %cst_69 : f32 to vector<8x32xf32>
    %222 = arith.addf %220, %221 : vector<8x32xf32>
    %cst_70 = arith.constant 5.000000e-01 : f32
    %223 = vector.broadcast %cst_70 : f32 to vector<8x32xf32>
    %224 = arith.mulf %223, %222 : vector<8x32xf32>
    %225 = vector.extract_strided_slice %219 {offsets = [0, 32], sizes = [8, 32], strides = [1, 1]} : vector<8x128xf32> to vector<8x32xf32>
    %cst_71 = arith.constant 1.000000e+00 : f32
    %226 = vector.broadcast %cst_71 : f32 to vector<8x32xf32>
    %227 = arith.addf %225, %226 : vector<8x32xf32>
    %cst_72 = arith.constant 5.000000e-01 : f32
    %228 = vector.broadcast %cst_72 : f32 to vector<8x32xf32>
    %229 = arith.mulf %228, %227 : vector<8x32xf32>
    %230 = vector.extract_strided_slice %219 {offsets = [0, 64], sizes = [8, 32], strides = [1, 1]} : vector<8x128xf32> to vector<8x32xf32>
    %231 = vector.extract_strided_slice %219 {offsets = [0, 96], sizes = [8, 32], strides = [1, 1]} : vector<8x128xf32> to vector<8x32xf32>
    %cst_73 = arith.constant 1.000000e+00 : f32
    %232 = vector.broadcast %cst_73 : f32 to vector<8x32xf32>
    %233 = arith.addf %231, %232 : vector<8x32xf32>
    %cst_74 = arith.constant 5.000000e-01 : f32
    %234 = vector.broadcast %cst_74 : f32 to vector<8x32xf32>
    %235 = arith.mulf %234, %233 : vector<8x32xf32>
    %236 = arith.mulf %229, %210 : vector<8x32xf32>
    %237 = arith.mulf %224, %230 : vector<8x32xf32>
    %238 = arith.addf %236, %237 : vector<8x32xf32>
    %239 = math.tanh %238 : vector<8x32xf32>
    %240 = arith.mulf %235, %239 : vector<8x32xf32>
    %c56 = arith.constant 56 : index
    %c0_75 = arith.constant 0 : index
    %241 = vector.load %arg7[%c56, %c0_75] : memref<64x32xf32, #tpu.memory_space<vmem>>, vector<8x32xf32>
    tpu.vector_store %arg7[%c56, %c0_75], %240 {strides = array<i32>} : memref<64x32xf32, #tpu.memory_space<vmem>>, vector<8x32xf32>,
    %c0_76 = arith.constant 0 : index
    %c0_77 = arith.constant 0 : index
    %242 = vector.load %arg7[%c0_76, %c0_77] : memref<64x32xf32, #tpu.memory_space<vmem>>, vector<64x32xf32>
    %c0_78 = arith.constant 0 : index
    %c0_79 = arith.constant 0 : index
    %243 = vector.load %arg4[%c0_78, %c0_79] : memref<32x128xf32, #tpu.memory_space<vmem>>, vector<32x128xf32>
    %cst_80 = arith.constant dense<0.000000e+00> : vector<64x128xf32>
    %244 = tpu.matmul %242, %243, %cst_80 {dimension_numbers = #tpu.dot_dimension_numbers<[1], [0], [0], [1], [0, 0, 1, 1], [], []>} : vector<64x32xf32>, vector<32x128xf32>, vector<64x128xf32> -> vector<64x128xf32>
    %c0_81 = arith.constant 0 : index
    %c0_82 = arith.constant 0 : index
    %245 = vector.load %arg5[%c0_81, %c0_82] : memref<1x128xf32, #tpu.memory_space<vmem>>, vector<1x128xf32>
    %246 = vector.broadcast %245 : vector<1x128xf32> to vector<64x128xf32>
    %247 = arith.addf %244, %246 : vector<64x128xf32>
    %c0_83 = arith.constant 0 : index
    %c0_84 = arith.constant 0 : index
    %248 = vector.load %arg6[%c0_83, %c0_84] : memref<64x128xf32, #tpu.memory_space<vmem>>, vector<64x128xf32>
    tpu.vector_store %arg6[%c0_83, %c0_84], %247 {strides = array<i32>} : memref<64x128xf32, #tpu.memory_space<vmem>>, vector<64x128xf32>,
    return
  }
}

</mosaic_0001>

<bundles_post_ra>
// kernel: lstm_decoder_forward.1
= control target key start
LH: loop header
LB: loop body
LE: loop exit
PB: predicated region body
PF: predicated region fallthrough
CT: control target
= control target key end

     0   :  { %vm39_vm0 = vcmask 261120   ;;  %v670_v11 = vmov 0.0   ;;  %v109_v13 = vlaneseq  ;;  %v671_v19 = vmov 0.5   ;;  %s672_s19 = smov 64   ;;  %s938_s1 = inlined_call_operand.vmem [shape: f32[32,128], index: 1, kind: input, shape index: {}]   ;;  %s939_s2 = inlined_call_operand.vmem [shape: f32[32,128], index: 2, kind: input, shape index: {}]   ;;  %s940_s0 = inlined_call_operand.vmem [shape: f32[64,32], index: 0, kind: input, shape index: {}]   ;;  %s941_s3 = inlined_call_operand.vmem [shape: f32[1,128], index: 3, kind: input, shape index: {}]   ;;  %s942_s4 = inlined_call_operand.vmem [shape: f32[32,128], index: 4, kind: input, shape index: {}]   ;;  %s943_s5 = inlined_call_operand.vmem [shape: f32[1,128], index: 5, kind: input, shape index: {}]   ;;  %s944_s6 = inlined_call_operand.vmem [shape: f32[64,128], index: 6, kind: output, shape index: {}]  }
   0x1   :  { %v34_v0 = vld [vmem:[%s938_s1 + $0x18] sm:$0xff]  ;;  %v33_v1 = vld [vmem:[%s938_s1 + $0x10] sm:$0xff]  ;;  %v32_v3 = vld [vmem:[%s938_s1 + $0x8] sm:$0xff] }
   0x2   :  { %624 = vmatpush.msra.mxu2 %v34_v0  ;;  %v718_v2 = vld [vmem:[%s939_s2 + $0x18] sm:$0xff]  ;;  %76 = vmatpush.msra.mxu0 %v34_v0  ;;  %v728_v4 = vld [vmem:[%s939_s2 + $0x10] sm:$0xff]  ;;  %v31_v5 = vld [vmem:[%s938_s1] sm:$0xff]  ;;  %v110_v14 = vand.u32 127, %v109_v13 }
   0x3   :  { %228 = vmatpush.msra.mxu3 %v718_v2  ;;  %277 = vmatpush.msra.mxu1 %v718_v2  ;;  %v29_v6 = vld [vmem:[%s940_s0 + $0x30] sm:$0xff]  ;;  %v741_v7 = vld [vmem:[%s939_s2 + $0x8] sm:$0xff]  ;;  %v23_v8 = vld [vmem:[%s940_s0] sm:$0xff] }
   0x4   :  { %625 = vmatpush.msra.mxu2 %v33_v1  ;;  %77 = vmatpush.msra.mxu0 %v33_v1  ;;  %v752_v9 = vld [vmem:[%s939_s2] sm:$0xff]  ;;  %v30_v10 = vld [vmem:[%s940_s0 + $0x38] sm:$0xff]  ;;  %vm111_vm1 = vcmp.ge.s32.totalorder %v110_v14, 64  ;;  %vm112_vm2 = vcmp.lt.s32.totalorder %v110_v14, 96  ;;  %v24_v35 = vld [vmem:[%s940_s0 + $0x8] sm:$0xff] }
   0x5   :  { %229 = vmatpush.msra.mxu3 %v728_v4  ;;  %278 = vmatpush.msra.mxu1 %v728_v4  ;;  %v788_v17 = vld [vmem:[%s941_s3] ss:$0 sm:$0xff]  ;;  %vm113_vm3 = vmand %vm111_vm1, %vm112_vm2  ;;  %s673_s3 = smov 32   ;;  %v25_v53 = vld [vmem:[%s940_s0 + $0x10] sm:$0xff] }
   0x6   :  { %626 = vmatpush.msra.mxu2 %v32_v3  ;;  %78 = vmatpush.msra.mxu0 %v32_v3  ;;  %v791_v20 = vsel %vm113_vm3, 1.0, %v671_v19 }
   0x7   :  { %230 = vmatpush.msra.mxu3 %v741_v7  ;;  %279 = vmatpush.msra.mxu1 %v741_v7 }
   0x8   :  { %627 = vmatpush.msra.mxu2 %v31_v5  ;;  %79 = vmatpush.msra.mxu0 %v31_v5  ;;  %v26_v5 = vld [vmem:[%s940_s0 + $0x18] sm:$0xff] }
   0x9   :  { %607 = vmatmul.msk.f32.vlgmr.msra.gmra.mxu2 %vm39_vm0, %v29_v6  ;;  %601 = vmatmul.msk.f32.vlgmr.msra.gmra.mxu0 %vm39_vm0, %v23_v8 }
   0xa   :  { %130 = vmatpush.msrb.mxu2 %v718_v2  ;;  %231 = vmatpush.msra.mxu3 %v752_v9 }
   0xb   :  { %280 = vmatpush.msra.mxu1 %v752_v9 }
   0xc   :  { %375 = vmatpush.msrb.mxu3 %v718_v2  ;;  %131 = vmatpush.msrb.mxu2 %v728_v4 }
   0xd   :  { %424 = vmatpush.msrb.mxu1 %v718_v2 }
   0xe   :  { %376 = vmatpush.msrb.mxu3 %v728_v4  ;;  %132 = vmatpush.msrb.mxu2 %v741_v7 }
   0xf   :  { %425 = vmatpush.msrb.mxu1 %v728_v4 }
  0x10   :  { %377 = vmatpush.msrb.mxu3 %v741_v7  ;;  %133 = vmatpush.msrb.mxu2 %v752_v9 }
  0x11   :  { %426 = vmatpush.msrb.mxu1 %v741_v7  ;;  %608 = vmatmul.msk.f32.gmra.mxu2 %vm39_vm0, %v30_v10 }
  0x12   :  { %378 = vmatpush.msrb.mxu3 %v752_v9  ;;  %179 = vmatpush.msra.mxu2 %v718_v2 }
  0x13   :  { %427 = vmatpush.msrb.mxu1 %v752_v9  ;;  %602 = vmatmul.msk.f32.gmra.mxu0 %vm39_vm0, %v24_v35 }
  0x14   :  { %180 = vmatpush.msra.mxu2 %v728_v4 }
  0x16   :  { %181 = vmatpush.msra.mxu2 %v741_v7 }
  0x18   :  { %182 = vmatpush.msra.mxu2 %v752_v9 }
  0x19   :  { %134 = vmatmul.f32.vlgmr.msrb.gmra.mxu2 %v670_v11 }
  0x1a   :  { %326 = vmatpush.msrb.mxu2 %v718_v2 }
  0x1b   :  { %603 = vmatmul.msk.f32.gmra.mxu0 %vm39_vm0, %v25_v53 }
  0x1c   :  { %327 = vmatpush.msrb.mxu2 %v728_v4 }
  0x1e   :  { %328 = vmatpush.msrb.mxu2 %v741_v7 }
  0x20   :  { %329 = vmatpush.msrb.mxu2 %v752_v9 }
  0x23   :  { %604 = vmatmul.msk.f32.gmra.mxu0 %vm39_vm0, %v26_v5 }
  0x86   :  { %v81_v16 = vpop.f32.mrf.mxu0 }
  0x87   :  { %v82_v18 = vadd.f32 %v788_v17, %v81_v16 }
  0x8c   :  { %v781_v12 = vpop.f32.mrf.mxu2 }
  0x90   :  { %v84_v37 = vpop.f32.mrf.mxu0 }
  0x91   :  { %v85_v38 = vadd.f32 %v788_v17, %v84_v37 }
  0x94   :  { %v783_v15 = vpop.f32.mrf.mxu2 }
  0x98   :  { %v87_v55 = vpop.f32.mrf.mxu0 }
  0x99   :  { %v88_v56 = vadd.f32 %v788_v17, %v87_v55 }
  0x9c   :  { %v135_v21 = vpop.f32.mrf.mxu2 }
  0x9d   :  { %v138_v22 = vadd.f32 %v135_v21, %v82_v18 }
  0x9f   :  { %v139_v23 = vmul.f32 %v138_v22, %v791_v20 }
  0xa1   :  { %638 = vtanh.f32 %v139_v23 }
  0xa7   :  { %v639_v24 = vpop.eup %638 }
  0xa8   :  { %145 = vrot.lane.b32.xlu0 %v639_v24, %s672_s19  ;;  %v141_v25 = vadd.f32 1.0, %v639_v24 }
  0xaa   :  { %v142_v26 = vmul.f32 0.5, %v141_v25 }
  0xac   :  { %v143_v29 = vmul.f32 0.0, %v142_v26 }
 0x11a   :  { %v146_v27 = vpop.permute.xlu0 %145 }
 0x11b   :  { %v148_v28 = vmul.f32 %v146_v27, %v142_v26 }
 0x11d   :  { %150 = vrot.lane.b32.xlu0 %v148_v28, %s673_s3 }
 0x18f   :  { %v151_v30 = vpop.permute.xlu0 %150 }
 0x190   :  { %v153_v31 = vadd.f32 %v151_v30, %v143_v29  ;;  %v27_v29 = vld [vmem:[%s940_s0 + $0x20] sm:$0xff] }
 0x191   :  { %605 = vmatmul.msk.f32.gmra.mxu0 %vm39_vm0, %v27_v29 }
 0x192   :  { %640 = vtanh.f32 %v153_v31 }
 0x198   :  { %v641_v32 = vpop.eup %640 }
 0x199   :  { %156 = vrot.lane.b32.xlu1 %v641_v32, %s672_s19 }
 0x20b   :  { %v157_v33 = vpop.permute.xlu1 %156 }
 0x20c   :  { %v159_v34 = vmul.f32 %v157_v33, %v142_v26 }
 0x20e   :  { %161 = vrot.lane.b32.xlu1 %v159_v34, %s673_s3 }
 0x280   :  { %v162_v36 = vpop.permute.xlu1 %161 }
 0x281   :  { %164 = vst.msk [vmem:[#allocation2] sm:$0xff] %vm39_vm0, %v162_v36  ;;  %609 = vmatmul.msk.f32.vlgmr.msra.gmra.mxu2 %vm39_vm0, %v162_v36 }
 0x282   :  { %473 = vmatpush.msra.mxu2 %v718_v2 }
 0x284   :  { %474 = vmatpush.msra.mxu2 %v728_v4 }
 0x286   :  { %475 = vmatpush.msra.mxu2 %v741_v7 }
 0x288   :  { %476 = vmatpush.msra.mxu2 %v752_v9  ;;  %v90_v9 = vpop.f32.mrf.mxu0 }
 0x289   :  { %v91_v10 = vadd.f32 %v788_v17, %v90_v9 }
 0x304   :  { %v184_v39 = vpop.f32.mrf.mxu2 }
 0x305   :  { %v187_v40 = vadd.f32 %v184_v39, %v85_v38 }
 0x307   :  { %v188_v41 = vmul.f32 %v187_v40, %v791_v20 }
 0x309   :  { %642 = vtanh.f32 %v188_v41 }
 0x30f   :  { %v643_v42 = vpop.eup %642 }
 0x310   :  { %194 = vrot.lane.b32.xlu2 %v643_v42, %s672_s19  ;;  %v190_v43 = vadd.f32 1.0, %v643_v42 }
 0x312   :  { %v191_v44 = vmul.f32 0.5, %v190_v43 }
 0x314   :  { %v192_v47 = vmul.f32 %v191_v44, %v153_v31  ;;  %v93_v31 = vpop.f32.mrf.mxu0 }
 0x315   :  { %v94_v32 = vadd.f32 %v788_v17, %v93_v31 }
 0x36a   :  { %v195_v45 = vpop.permute.xlu2 %194 }
 0x36b   :  { %v197_v46 = vmul.f32 %v195_v45, %v191_v44 }
 0x36d   :  { %199 = vrot.lane.b32.xlu2 %v197_v46, %s673_s3 }
 0x3c7   :  { %v200_v48 = vpop.permute.xlu2 %199 }
 0x3c8   :  { %v202_v49 = vadd.f32 %v200_v48, %v192_v47  ;;  %v519_v47 = vld [vmem:[%s942_s4 + $0x18] sm:$0xff]  ;;  %v518_v48 = vld [vmem:[%s942_s4 + $0x10] sm:$0xff] }
 0x3ca   :  { %644 = vtanh.f32 %v202_v49 }
 0x3d0   :  { %v645_v50 = vpop.eup %644 }
 0x3d1   :  { %205 = vrot.lane.b32.xlu0 %v645_v50, %s672_s19  ;;  %v517_v50 = vld [vmem:[%s942_s4 + $0x8] sm:$0xff] }
 0x443   :  { %v206_v51 = vpop.permute.xlu0 %205 }
 0x444   :  { %v208_v52 = vmul.f32 %v206_v51, %v191_v44  ;;  %v516_v51 = vld [vmem:[%s942_s4] sm:$0xff] }
 0x446   :  { %210 = vrot.lane.b32.xlu1 %v208_v52, %s673_s3 }
 0x4b8   :  { %v211_v54 = vpop.permute.xlu1 %210 }
 0x4b9   :  { %213 = vst.msk [vmem:[#allocation2 + $0x8] sm:$0xff] %vm39_vm0, %v211_v54  ;;  %610 = vmatmul.msk.f32.vlgmr.msra.gmra.mxu3 %vm39_vm0, %v211_v54 }
 0x4ba   :  { %628 = vmatpush.msra.mxu3 %v519_v47 }
 0x4bc   :  { %629 = vmatpush.msra.mxu3 %v518_v48 }
 0x4be   :  { %630 = vmatpush.msra.mxu3 %v517_v50 }
 0x4c0   :  { %631 = vmatpush.msra.mxu3 %v516_v51 }
 0x53c   :  { %v233_v57 = vpop.f32.mrf.mxu3 }
 0x53d   :  { %v236_v58 = vadd.f32 %v233_v57, %v88_v56 }
 0x53f   :  { %v237_v59 = vmul.f32 %v236_v58, %v791_v20 }
 0x541   :  { %646 = vtanh.f32 %v237_v59  ;;  %v874_v59 = vld [vmem:[%s943_s5] ss:$0 sm:$0xff] }
 0x547   :  { %v647_v60 = vpop.eup %646 }
 0x548   :  { %243 = vrot.lane.b32.xlu2 %v647_v60, %s672_s19  ;;  %v239_v61 = vadd.f32 1.0, %v647_v60 }
 0x54a   :  { %v240_v62 = vmul.f32 0.5, %v239_v61 }
 0x54c   :  { %v241_v1 = vmul.f32 %v240_v62, %v202_v49  ;;  %v28_v49 = vld [vmem:[%s940_s0 + $0x28] sm:$0xff] }
 0x54d   :  { %606 = vmatmul.msk.f32.gmra.mxu0 %vm39_vm0, %v28_v49 }
 0x5a2   :  { %v244_v63 = vpop.permute.xlu2 %243 }
 0x5a3   :  { %v246_v0 = vmul.f32 %v244_v63, %v240_v62 }
 0x5a5   :  { %248 = vrot.lane.b32.xlu0 %v246_v0, %s673_s3 }
 0x5ca   :  { %v96_v54 = vpop.f32.mrf.mxu0 }
 0x5cb   :  { %v97_v55 = vadd.f32 %v788_v17, %v96_v54 }
 0x617   :  { %v249_v2 = vpop.permute.xlu0 %248 }
 0x618   :  { %v251_v3 = vadd.f32 %v249_v2, %v241_v1 }
 0x61a   :  { %648 = vtanh.f32 %v251_v3 }
 0x620   :  { %v649_v4 = vpop.eup %648 }
 0x621   :  { %254 = vrot.lane.b32.xlu1 %v649_v4, %s672_s19 }
 0x693   :  { %v255_v6 = vpop.permute.xlu1 %254 }
 0x694   :  { %v257_v7 = vmul.f32 %v255_v6, %v240_v62 }
 0x696   :  { %259 = vrot.lane.b32.xlu2 %v257_v7, %s673_s3 }
 0x6f0   :  { %v260_v8 = vpop.permute.xlu2 %259 }
 0x6f1   :  { %262 = vst.msk [vmem:[#allocation2 + $0x10] sm:$0xff] %vm39_vm0, %v260_v8  ;;  %611 = vmatmul.msk.f32.vlgmr.msra.gmra.mxu1 %vm39_vm0, %v260_v8 }
 0x6f2   :  { %560 = vmatpush.msra.mxu1 %v519_v47 }
 0x6f4   :  { %561 = vmatpush.msra.mxu1 %v518_v48 }
 0x6f6   :  { %562 = vmatpush.msra.mxu1 %v517_v50 }
 0x6f8   :  { %563 = vmatpush.msra.mxu1 %v516_v51 }
 0x76e   :  { %v282_v11 = vpop.f32.mrf.mxu1 }
 0x76f   :  { %v285_v13 = vadd.f32 %v282_v11, %v91_v10  ;;  %v508_v10 = vld [vmem:[#allocation2] sm:$0xff] }
 0x771   :  { %v286_v14 = vmul.f32 %v285_v13, %v791_v20  ;;  %v509_v13 = vld [vmem:[#allocation2 + $0x8] sm:$0xff] }
 0x773   :  { %650 = vtanh.f32 %v286_v14  ;;  %v510_v14 = vld [vmem:[#allocation2 + $0x10] sm:$0xff] }
 0x779   :  { %v651_v16 = vpop.eup %650 }
 0x77a   :  { %292 = vrot.lane.b32.xlu0 %v651_v16, %s672_s19  ;;  %v288_v18 = vadd.f32 1.0, %v651_v16 }
 0x77c   :  { %v289_v19 = vmul.f32 0.5, %v288_v18  ;;  %v100_v18 = vadd.f32 %v788_v17, %v781_v12 }
 0x77e   :  { %v290_v23 = vmul.f32 %v289_v19, %v251_v3 }
 0x7ec   :  { %v293_v21 = vpop.permute.xlu0 %292 }
 0x7ed   :  { %v295_v22 = vmul.f32 %v293_v21, %v289_v19 }
 0x7ef   :  { %297 = vrot.lane.b32.xlu1 %v295_v22, %s673_s3 }
 0x861   :  { %v298_v24 = vpop.permute.xlu1 %297 }
 0x862   :  { %v300_v25 = vadd.f32 %v298_v24, %v290_v23 }
 0x864   :  { %652 = vtanh.f32 %v300_v25 }
 0x86a   :  { %v653_v26 = vpop.eup %652 }
 0x86b   :  { %303 = vrot.lane.b32.xlu2 %v653_v26, %s672_s19 }
 0x8c5   :  { %v304_v27 = vpop.permute.xlu2 %303 }
 0x8c6   :  { %v306_v28 = vmul.f32 %v304_v27, %v289_v19 }
 0x8c8   :  { %308 = vrot.lane.b32.xlu0 %v306_v28, %s673_s3 }
 0x93a   :  { %v309_v30 = vpop.permute.xlu0 %308 }
 0x93b   :  { %311 = vst.msk [vmem:[#allocation2 + $0x18] sm:$0xff] %vm39_vm0, %v309_v30  ;;  %612 = vmatmul.msk.f32.vlgmr.msrb.gmra.mxu2 %vm39_vm0, %v309_v30 }
 0x942   :  { %v511_v16 = vld [vmem:[#allocation2 + $0x18] sm:$0xff] }
 0x9be   :  { %v331_v33 = vpop.f32.mrf.mxu2 }
 0x9bf   :  { %v334_v34 = vadd.f32 %v331_v33, %v94_v32 }
 0x9c1   :  { %v335_v35 = vmul.f32 %v334_v34, %v791_v20 }
 0x9c3   :  { %654 = vtanh.f32 %v335_v35 }
 0x9c9   :  { %v655_v36 = vpop.eup %654 }
 0x9ca   :  { %341 = vrot.lane.b32.xlu1 %v655_v36, %s672_s19  ;;  %v337_v37 = vadd.f32 1.0, %v655_v36 }
 0x9cc   :  { %v338_v38 = vmul.f32 0.5, %v337_v37 }
 0x9ce   :  { %v339_v41 = vmul.f32 %v338_v38, %v300_v25 }
 0xa3c   :  { %v342_v39 = vpop.permute.xlu1 %341 }
 0xa3d   :  { %v344_v40 = vmul.f32 %v342_v39, %v338_v38 }
 0xa3f   :  { %346 = vrot.lane.b32.xlu2 %v344_v40, %s673_s3 }
 0xa99   :  { %v347_v42 = vpop.permute.xlu2 %346 }
 0xa9a   :  { %v349_v43 = vadd.f32 %v347_v42, %v339_v41 }
 0xa9c   :  { %656 = vtanh.f32 %v349_v43 }
 0xaa2   :  { %v657_v44 = vpop.eup %656 }
 0xaa3   :  { %352 = vrot.lane.b32.xlu0 %v657_v44, %s672_s19 }
 0xb15   :  { %v353_v45 = vpop.permute.xlu0 %352 }
 0xb16   :  { %v355_v46 = vmul.f32 %v353_v45, %v338_v38  ;;  %v103_v45 = vadd.f32 %v788_v17, %v783_v15 }
 0xb18   :  { %357 = vrot.lane.b32.xlu1 %v355_v46, %s673_s3 }
 0xb8a   :  { %v358_v52 = vpop.permute.xlu1 %357 }
 0xb8b   :  { %360 = vst.msk [vmem:[#allocation2 + $0x20] sm:$0xff] %vm39_vm0, %v358_v52  ;;  %613 = vmatmul.msk.f32.vlgmr.msrb.gmra.mxu3 %vm39_vm0, %v358_v52 }
 0xb92   :  { %v512_v53 = vld [vmem:[#allocation2 + $0x20] sm:$0xff] }
 0xb93   :  { %620 = vmatmul.msk.f32.vlgmr.msra.gmra.mxu3 %vm39_vm0, %v512_v53 }
 0xc0e   :  { %v380_v56 = vpop.f32.mrf.mxu3 }
 0xc0f   :  { %v383_v57 = vadd.f32 %v380_v56, %v97_v55 }
 0xc11   :  { %v384_v58 = vmul.f32 %v383_v57, %v791_v20 }
 0xc13   :  { %658 = vtanh.f32 %v384_v58 }
 0xc16   :  { %v577_v60 = vpop.f32.mrf.mxu3 }
 0xc17   :  { %v578_v61 = vadd.f32 %v874_v59, %v577_v60 }
 0xc19   :  { %v659_v62 = vpop.eup %658  ;;  %593 = vst [vmem:[%s944_s6 + $0x20] sm:$0xff] %v578_v61 }
 0xc1a   :  { %390 = vrot.lane.b32.xlu2 %v659_v62, %s672_s19  ;;  %v386_v63 = vadd.f32 1.0, %v659_v62 }
 0xc1c   :  { %v387_v0 = vmul.f32 0.5, %v386_v63 }
 0xc1e   :  { %v388_v3 = vmul.f32 %v387_v0, %v349_v43 }
 0xc74   :  { %v391_v1 = vpop.permute.xlu2 %390 }
 0xc75   :  { %v393_v2 = vmul.f32 %v391_v1, %v387_v0 }
 0xc77   :  { %395 = vrot.lane.b32.xlu0 %v393_v2, %s673_s3 }
 0xce9   :  { %v396_v4 = vpop.permute.xlu0 %395 }
 0xcea   :  { %v398_v5 = vadd.f32 %v396_v4, %v388_v3 }
 0xcec   :  { %660 = vtanh.f32 %v398_v5 }
 0xcf2   :  { %v661_v6 = vpop.eup %660 }
 0xcf3   :  { %401 = vrot.lane.b32.xlu1 %v661_v6, %s672_s19 }
 0xd65   :  { %v402_v7 = vpop.permute.xlu1 %401 }
 0xd66   :  { %v404_v8 = vmul.f32 %v402_v7, %v387_v0 }
 0xd68   :  { %406 = vrot.lane.b32.xlu2 %v404_v8, %s673_s3 }
 0xdc2   :  { %v407_v9 = vpop.permute.xlu2 %406 }
 0xdc3   :  { %409 = vst.msk [vmem:[#allocation2 + $0x28] sm:$0xff] %vm39_vm0, %v407_v9  ;;  %614 = vmatmul.msk.f32.vlgmr.msrb.gmra.mxu1 %vm39_vm0, %v407_v9 }
 0xdca   :  { %v513_v11 = vld [vmem:[#allocation2 + $0x28] sm:$0xff] }
 0xdcb   :  { %616 = vmatmul.msk.f32.vlgmr.msra.gmra.mxu1 %vm39_vm0, %v508_v10  ;;  %621 = vmatmul.msk.f32.gmra.mxu3 %vm39_vm0, %v513_v11 }
 0xdd3   :  { %617 = vmatmul.msk.f32.gmra.mxu1 %vm39_vm0, %v509_v13 }
 0xddb   :  { %618 = vmatmul.msk.f32.gmra.mxu1 %vm39_vm0, %v510_v14 }
 0xde3   :  { %619 = vmatmul.msk.f32.gmra.mxu1 %vm39_vm0, %v511_v16 }
 0xe40   :  { %v429_v19 = vpop.f32.mrf.mxu1 }
 0xe41   :  { %v432_v21 = vadd.f32 %v429_v19, %v100_v18 }
 0xe43   :  { %v433_v22 = vmul.f32 %v432_v21, %v791_v20 }
 0xe45   :  { %662 = vtanh.f32 %v433_v22 }
 0xe48   :  { %v565_v23 = vpop.f32.mrf.mxu1 }
 0xe49   :  { %v566_v24 = vadd.f32 %v874_v59, %v565_v23 }
 0xe4b   :  { %v663_v25 = vpop.eup %662  ;;  %589 = vst [vmem:[%s944_s6] sm:$0xff] %v566_v24 }
 0xe4c   :  { %439 = vrot.lane.b32.xlu0 %v663_v25, %s672_s19  ;;  %v435_v33 = vadd.f32 1.0, %v663_v25 }
 0xe4e   :  { %v580_v26 = vpop.f32.mrf.mxu3  ;;  %v436_v34 = vmul.f32 0.5, %v435_v33 }
 0xe4f   :  { %v581_v27 = vadd.f32 %v874_v59, %v580_v26 }
 0xe50   :  { %v568_v28 = vpop.f32.mrf.mxu1  ;;  %v437_v37 = vmul.f32 %v436_v34, %v398_v5 }
 0xe51   :  { %594 = vst [vmem:[%s944_s6 + $0x28] sm:$0xff] %v581_v27  ;;  %v569_v12 = vadd.f32 %v874_v59, %v568_v28 }
 0xe53   :  { %590 = vst [vmem:[%s944_s6 + $0x8] sm:$0xff] %v569_v12 }
 0xe58   :  { %v571_v29 = vpop.f32.mrf.mxu1 }
 0xe59   :  { %v572_v30 = vadd.f32 %v874_v59, %v571_v29 }
 0xe5b   :  { %591 = vst [vmem:[%s944_s6 + $0x10] sm:$0xff] %v572_v30 }
 0xe60   :  { %v574_v31 = vpop.f32.mrf.mxu1 }
 0xe61   :  { %v575_v32 = vadd.f32 %v874_v59, %v574_v31 }
 0xe63   :  { %592 = vst [vmem:[%s944_s6 + $0x18] sm:$0xff] %v575_v32 }
 0xebe   :  { %v440_v35 = vpop.permute.xlu0 %439 }
 0xebf   :  { %v442_v36 = vmul.f32 %v440_v35, %v436_v34 }
 0xec1   :  { %444 = vrot.lane.b32.xlu1 %v442_v36, %s673_s3 }
 0xf33   :  { %v445_v38 = vpop.permute.xlu1 %444 }
 0xf34   :  { %v447_v39 = vadd.f32 %v445_v38, %v437_v37 }
 0xf36   :  { %664 = vtanh.f32 %v447_v39 }
 0xf3c   :  { %v665_v40 = vpop.eup %664 }
 0xf3d   :  { %450 = vrot.lane.b32.xlu2 %v665_v40, %s672_s19 }
 0xf97   :  { %v451_v41 = vpop.permute.xlu2 %450 }
 0xf98   :  { %v453_v42 = vmul.f32 %v451_v41, %v436_v34 }
 0xf9a   :  { %455 = vrot.lane.b32.xlu0 %v453_v42, %s673_s3 }
0x100c   :  { %v456_v43 = vpop.permute.xlu0 %455 }
0x100d   :  { %458 = vst.msk [vmem:[#allocation2 + $0x30] sm:$0xff] %vm39_vm0, %v456_v43  ;;  %615 = vmatmul.msk.f32.vlgmr.msra.gmra.mxu2 %vm39_vm0, %v456_v43 }
0x1014   :  { %v514_v44 = vld [vmem:[#allocation2 + $0x30] sm:$0xff] }
0x1015   :  { %622 = vmatmul.msk.f32.gmra.mxu3 %vm39_vm0, %v514_v44 }
0x1090   :  { %v478_v46 = vpop.f32.mrf.mxu2 }
0x1091   :  { %v481_v47 = vadd.f32 %v478_v46, %v103_v45 }
0x1093   :  { %v482_v48 = vmul.f32 %v481_v47, %v791_v20 }
0x1095   :  { %666 = vtanh.f32 %v482_v48 }
0x1098   :  { %v583_v49 = vpop.f32.mrf.mxu3 }
0x1099   :  { %v584_v50 = vadd.f32 %v874_v59, %v583_v49 }
0x109b   :  { %v667_v51 = vpop.eup %666  ;;  %595 = vst [vmem:[%s944_s6 + $0x30] sm:$0xff] %v584_v50 }
0x109c   :  { %488 = vrot.lane.b32.xlu1 %v667_v51, %s672_s19  ;;  %v484_v52 = vadd.f32 1.0, %v667_v51 }
0x109e   :  { %v485_v53 = vmul.f32 0.5, %v484_v52 }
0x10a0   :  { %v486_v15 = vmul.f32 %v485_v53, %v447_v39 }
0x110e   :  { %v489_v54 = vpop.permute.xlu1 %488 }
0x110f   :  { %v491_v55 = vmul.f32 %v489_v54, %v485_v53 }
0x1111   :  { %493 = vrot.lane.b32.xlu2 %v491_v55, %s673_s3 }
0x116b   :  { %v494_v17 = vpop.permute.xlu2 %493 }
0x116c   :  { %v496_v20 = vadd.f32 %v494_v17, %v486_v15 }
0x116e   :  { %668 = vtanh.f32 %v496_v20 }
0x1174   :  { %v669_v56 = vpop.eup %668 }
0x1175   :  { %499 = vrot.lane.b32.xlu0 %v669_v56, %s672_s19 }
0x11e7   :  { %v500_v57 = vpop.permute.xlu0 %499 }
0x11e8   :  { %v502_v58 = vmul.f32 %v500_v57, %v485_v53 }
0x11ea   :  { %504 = vrot.lane.b32.xlu1 %v502_v58, %s673_s3 }
0x125c   :  { %v505_v60 = vpop.permute.xlu1 %504 }
0x125d   :  { %507 = vst.msk [vmem:[#allocation2 + $0x38] sm:$0xff] %vm39_vm0, %v505_v60 }
0x1264   :  { %v515_v61 = vld [vmem:[#allocation2 + $0x38] sm:$0xff] }
0x1265   :  { %623 = vmatmul.msk.f32.gmra.mxu3 %vm39_vm0, %v515_v61 }
0x12e8   :  { %v586_v62 = vpop.f32.mrf.mxu3 }
0x12e9   :  { %v587_v63 = vadd.f32 %v874_v59, %v586_v62 }
0x12eb   :  { %596 = vst [vmem:[%s944_s6 + $0x38] sm:$0xff] %v587_v63 }

</bundles_post_ra>
